<compile_context>
chip_gen: v5e
topology: v5e:2x2
jax: 0.10.0
libtpu: 0.0.40
codegen_flags: <defaults>
</compile_context>

<pallas_src>
import functools

import jax
import jax.numpy as jnp
from jax.experimental import pallas as pl
from jax.experimental.pallas import tpu as pltpu

_LANE = 128      # vreg lane width (last dim)
_SUBLANE = 8     # vreg sublane count (second-to-last dim)


def _round_up(n, m):
    return ((n + m - 1) // m) * m


def _mlp_kernel(x_ref, *refs, n_linear, compute_dtype):
    """Fused MLP forward over one batch tile.

    refs = (w0, b0, w1, b1, ..., w_{L-1}, b_{L-1}, out_ref)
    ReLU after every layer except the last (dropout is identity at inference).
    Matmul operands are in `compute_dtype`; accumulation is always f32.
    """
    out_ref = refs[-1]
    param_refs = refs[:-1]

    h = x_ref[...].astype(compute_dtype)
    for layer in range(n_linear):
        w = param_refs[2 * layer][...].astype(compute_dtype)
        b = param_refs[2 * layer + 1][...].astype(jnp.float32)
        acc = jnp.dot(h, w, preferred_element_type=jnp.float32) + b
        if layer != n_linear - 1:
            acc = jnp.maximum(acc, 0.0)
            # TODO(synk): training-mode dropout (stochastic masking) not implemented;
            # eval-mode dropout is the identity, matching inference semantics.
            h = acc.astype(compute_dtype)
        else:
            h = acc
    out_ref[...] = h.astype(out_ref.dtype)


def forecasting_model_forward(x, weights, biases, *, block_batch=None,
                              compute_dtype=None):
    """Runs the fused MLP in a single pallas_call, tiled over the batch dim.

    x: (batch, in_dim). weights[i]: (fan_in, fan_out). biases[i]: (fan_out,) or
    (1, fan_out). Handles ragged batch / non-128 feature dims by zero-padding in
    the wrapper and slicing the result.
    """
    assert len(weights) == len(biases)
    n_linear = len(weights)
    batch, in_dim = x.shape
    out_dim = weights[-1].shape[1]

    if compute_dtype is None:
        # Keep the input dtype for matmul operands (f32 here). Pass jnp.bfloat16
        # for higher MXU throughput on v6e/v7x (accumulation stays f32).
        compute_dtype = x.dtype

    # --- Pad feature dims to the 128-lane width (lane-dense operands/output). ---
    dims = [in_dim] + [w.shape[1] for w in weights]
    dims_p = [_round_up(d, _LANE) for d in dims]

    # --- Batch tile choice ----------------------------------------------------
    # Small problems: one grid step (amortize pipeline/step overhead entirely).
    # Large problems: 256-row tiles -> full MXU occupancy on v6e/v7x (2x256x256)
    # and a multiple of 128 for v5e; many "parallel" steps feed both v7x cores.
    if block_batch is None:
        if batch <= 512:
            block_batch = max(_round_up(batch, _SUBLANE), _SUBLANE)
        else:
            block_batch = 256
    batch_p = _round_up(batch, block_batch)

    x_p = jnp.zeros((batch_p, dims_p[0]), x.dtype).at[:batch, :in_dim].set(x)

    args = [x_p]
    in_specs = [pl.BlockSpec((block_batch, dims_p[0]), lambda i: (i, 0))]
    for layer, (w, b) in enumerate(zip(weights, biases)):
        fi, fo = w.shape
        fi_p, fo_p = dims_p[layer], dims_p[layer + 1]
        w_p = jnp.zeros((fi_p, fo_p), w.dtype).at[:fi, :fo].set(w)
        b2 = jnp.asarray(b).reshape(1, -1)
        b_p = jnp.zeros((1, fo_p), b2.dtype).at[:, :fo].set(b2)
        args.append(w_p)
        args.append(b_p)
        # Full-array blocks, same block index every grid step (weights resident).
        in_specs.append(pl.BlockSpec((fi_p, fo_p), lambda i: (0, 0)))
        in_specs.append(pl.BlockSpec((1, fo_p), lambda i: (0, 0)))

    out_dim_p = dims_p[-1]
    out_spec = pl.BlockSpec((block_batch, out_dim_p), lambda i: (i, 0))
    grid = (batch_p // block_batch,)

    kernel = functools.partial(_mlp_kernel, n_linear=n_linear,
                               compute_dtype=compute_dtype)

    out_p = pl.pallas_call(
        kernel,
        out_shape=jax.ShapeDtypeStruct((batch_p, out_dim_p), x.dtype),
        grid=grid,
        in_specs=in_specs,
        out_specs=out_spec,
        compiler_params=pltpu.CompilerParams(
            dimension_semantics=("parallel",)),
    )(*args)

    return out_p[:batch, :out_dim]


def init_params(key, in_dim, hid_dim, out_dim, n_layers, dtype=jnp.float32):
    """Deterministic parameter init matching the module's layer shapes.

    Returns weights as (fan_in, fan_out) and biases as (1, fan_out).
    """
    dims = [in_dim] + [hid_dim] * n_layers + [out_dim]
    weights, biases = [], []
    for fan_in, fan_out in zip(dims[:-1], dims[1:]):
        key, kw, kb = jax.random.split(key, 3)
        bound = 1.0 / jnp.sqrt(fan_in)
        weights.append(
            jax.random.uniform(kw, (fan_in, fan_out), dtype, -bound, bound))
        biases.append(
            jax.random.uniform(kb, (1, fan_out), dtype, -bound, bound))
    return weights, biases


def reference_forward(x, weights, biases):
    h = x
    for i, (w, b) in enumerate(zip(weights, biases)):
        h = h @ w + b
        if i != len(weights) - 1:
            h = jnp.maximum(h, 0.0)
    return h


if __name__ == "__main__":
    # Small shapes consistent with the module: a batch of feature vectors.
    in_dim, hid_dim, out_dim, n_layers = 16, 32, 8, 2
    batch = 64  # e.g. (B * num_nodes) flattened rows

    key = jax.random.PRNGKey(0)
    key, kx = jax.random.split(key)
    x = jax.random.normal(kx, (batch, in_dim), jnp.float32)

    weights, biases = init_params(key, in_dim, hid_dim, out_dim, n_layers)

    out = forecasting_model_forward(x, weights, biases)
    out = jax.block_until_ready(out)

    ref = reference_forward(x, weights, biases)
    assert out.shape == (batch, out_dim), out.shape
    assert jnp.allclose(out, ref, atol=1e-5, rtol=1e-5), \
        float(jnp.max(jnp.abs(out - ref)))

    print("KERNEL_OK")
</pallas_src>

<mosaic_0001>
module attributes {stable_mosaic.version = 11 : i64} {
  func.func @_mlp_kernel(%arg0: i32, %arg1: memref<64x128xf32, #tpu.memory_space<vmem>>, %arg2: memref<128x128xf32, #tpu.memory_space<vmem>>, %arg3: memref<1x128xf32, #tpu.memory_space<vmem>>, %arg4: memref<128x128xf32, #tpu.memory_space<vmem>>, %arg5: memref<1x128xf32, #tpu.memory_space<vmem>>, %arg6: memref<128x128xf32, #tpu.memory_space<vmem>>, %arg7: memref<1x128xf32, #tpu.memory_space<vmem>>, %arg8: memref<64x128xf32, #tpu.memory_space<vmem>>) attributes {dimension_semantics = [#tpu.dimension_semantics<parallel>], iteration_bounds = array<i64: 1>, scalar_prefetch = 0 : i64, scratch_operands = 0 : i64, tpu.core_type = #tpu.core_type<tc>, window_params = [{transform_indices = @transform_0, window_bounds = array<i64: 64, 128>}, {pipeline_mode = #tpu.pipeline_mode<synchronous>, transform_indices = @transform_1, window_bounds = array<i64: 128, 128>}, {pipeline_mode = #tpu.pipeline_mode<synchronous>, transform_indices = @transform_2, window_bounds = array<i64: 1, 128>}, {pipeline_mode = #tpu.pipeline_mode<synchronous>, transform_indices = @transform_3, window_bounds = array<i64: 128, 128>}, {pipeline_mode = #tpu.pipeline_mode<synchronous>, transform_indices = @transform_4, window_bounds = array<i64: 1, 128>}, {pipeline_mode = #tpu.pipeline_mode<synchronous>, transform_indices = @transform_5, window_bounds = array<i64: 128, 128>}, {pipeline_mode = #tpu.pipeline_mode<synchronous>, transform_indices = @transform_6, window_bounds = array<i64: 1, 128>}, {transform_indices = @transform_7, window_bounds = array<i64: 64, 128>}]} {
    %c0 = arith.constant 0 : index
    %c0_0 = arith.constant 0 : index
    %0 = vector.load %arg1[%c0, %c0_0] : memref<64x128xf32, #tpu.memory_space<vmem>>, vector<64x128xf32>
    %c0_1 = arith.constant 0 : index
    %c0_2 = arith.constant 0 : index
    %1 = vector.load %arg2[%c0_1, %c0_2] : memref<128x128xf32, #tpu.memory_space<vmem>>, vector<128x128xf32>
    %c0_3 = arith.constant 0 : index
    %c0_4 = arith.constant 0 : index
    %2 = vector.load %arg3[%c0_3, %c0_4] : memref<1x128xf32, #tpu.memory_space<vmem>>, vector<1x128xf32>
    %cst = arith.constant dense<0.000000e+00> : vector<64x128xf32>
    %3 = tpu.matmul %0, %1, %cst {dimension_numbers = #tpu.dot_dimension_numbers<[1], [0], [0], [1], [0, 0, 1, 1], [], []>} : vector<64x128xf32>, vector<128x128xf32>, vector<64x128xf32> -> vector<64x128xf32>
    %4 = vector.broadcast %2 : vector<1x128xf32> to vector<64x128xf32>
    %5 = arith.addf %3, %4 : vector<64x128xf32>
    %cst_5 = arith.constant 0.000000e+00 : f32
    %6 = vector.broadcast %cst_5 : f32 to vector<64x128xf32>
    %7 = arith.maximumf %5, %6 : vector<64x128xf32>
    %c0_6 = arith.constant 0 : index
    %c0_7 = arith.constant 0 : index
    %8 = vector.load %arg4[%c0_6, %c0_7] : memref<128x128xf32, #tpu.memory_space<vmem>>, vector<128x128xf32>
    %c0_8 = arith.constant 0 : index
    %c0_9 = arith.constant 0 : index
    %9 = vector.load %arg5[%c0_8, %c0_9] : memref<1x128xf32, #tpu.memory_space<vmem>>, vector<1x128xf32>
    %cst_10 = arith.constant dense<0.000000e+00> : vector<64x128xf32>
    %10 = tpu.matmul %7, %8, %cst_10 {dimension_numbers = #tpu.dot_dimension_numbers<[1], [0], [0], [1], [0, 0, 1, 1], [], []>} : vector<64x128xf32>, vector<128x128xf32>, vector<64x128xf32> -> vector<64x128xf32>
    %11 = vector.broadcast %9 : vector<1x128xf32> to vector<64x128xf32>
    %12 = arith.addf %10, %11 : vector<64x128xf32>
    %cst_11 = arith.constant 0.000000e+00 : f32
    %13 = vector.broadcast %cst_11 : f32 to vector<64x128xf32>
    %14 = arith.maximumf %12, %13 : vector<64x128xf32>
    %c0_12 = arith.constant 0 : index
    %c0_13 = arith.constant 0 : index
    %15 = vector.load %arg6[%c0_12, %c0_13] : memref<128x128xf32, #tpu.memory_space<vmem>>, vector<128x128xf32>
    %c0_14 = arith.constant 0 : index
    %c0_15 = arith.constant 0 : index
    %16 = vector.load %arg7[%c0_14, %c0_15] : memref<1x128xf32, #tpu.memory_space<vmem>>, vector<1x128xf32>
    %cst_16 = arith.constant dense<0.000000e+00> : vector<64x128xf32>
    %17 = tpu.matmul %14, %15, %cst_16 {dimension_numbers = #tpu.dot_dimension_numbers<[1], [0], [0], [1], [0, 0, 1, 1], [], []>} : vector<64x128xf32>, vector<128x128xf32>, vector<64x128xf32> -> vector<64x128xf32>
    %18 = vector.broadcast %16 : vector<1x128xf32> to vector<64x128xf32>
    %19 = arith.addf %17, %18 : vector<64x128xf32>
    %c0_17 = arith.constant 0 : index
    %c0_18 = arith.constant 0 : index
    %20 = vector.load %arg8[%c0_17, %c0_18] : memref<64x128xf32, #tpu.memory_space<vmem>>, vector<64x128xf32>
    tpu.vector_store %arg8[%c0_17, %c0_18], %19 {strides = array<i32>} : memref<64x128xf32, #tpu.memory_space<vmem>>, vector<64x128xf32>,
    return
  }
  func.func @transform_0(%arg0: i32) -> (i32, i32) {
    %c0_i32 = arith.constant 0 : i32
    %c0_i32_0 = arith.constant 0 : i32
    return %arg0, %c0_i32 : i32, i32
  }
  func.func @transform_1(%arg0: i32) -> (i32, i32) {
    %c0_i32 = arith.constant 0 : i32
    %c0_i32_0 = arith.constant 0 : i32
    %c0_i32_1 = arith.constant 0 : i32
    return %c0_i32, %c0_i32_0 : i32, i32
  }
  func.func @transform_2(%arg0: i32) -> (i32, i32) {
    %c0_i32 = arith.constant 0 : i32
    %c0_i32_0 = arith.constant 0 : i32
    %c0_i32_1 = arith.constant 0 : i32
    return %c0_i32, %c0_i32_0 : i32, i32
  }
  func.func @transform_3(%arg0: i32) -> (i32, i32) {
    %c0_i32 = arith.constant 0 : i32
    %c0_i32_0 = arith.constant 0 : i32
    %c0_i32_1 = arith.constant 0 : i32
    return %c0_i32, %c0_i32_0 : i32, i32
  }
  func.func @transform_4(%arg0: i32) -> (i32, i32) {
    %c0_i32 = arith.constant 0 : i32
    %c0_i32_0 = arith.constant 0 : i32
    %c0_i32_1 = arith.constant 0 : i32
    return %c0_i32, %c0_i32_0 : i32, i32
  }
  func.func @transform_5(%arg0: i32) -> (i32, i32) {
    %c0_i32 = arith.constant 0 : i32
    %c0_i32_0 = arith.constant 0 : i32
    %c0_i32_1 = arith.constant 0 : i32
    return %c0_i32, %c0_i32_0 : i32, i32
  }
  func.func @transform_6(%arg0: i32) -> (i32, i32) {
    %c0_i32 = arith.constant 0 : i32
    %c0_i32_0 = arith.constant 0 : i32
    %c0_i32_1 = arith.constant 0 : i32
    return %c0_i32, %c0_i32_0 : i32, i32
  }
  func.func @transform_7(%arg0: i32) -> (i32, i32) {
    %c0_i32 = arith.constant 0 : i32
    %c0_i32_0 = arith.constant 0 : i32
    return %arg0, %c0_i32 : i32, i32
  }
}

</mosaic_0001>

<bundles_post_ra>
// kernel: tpu_custom_call.1
= control target key start
LH: loop header
LB: loop body
LE: loop exit
PB: predicated region body
PF: predicated region fallthrough
CT: control target
= control target key end

     0   :  { %12 = vsyncpa [#allocation3], 0  ;;  %s582_s0 = inlined_call_operand.hbm [shape: f32[64,128], index: 0, kind: input, shape index: {}]   ;;  %s583_s1 = inlined_call_operand.hbm [shape: f32[128,128], index: 1, kind: input, shape index: {}]   ;;  %s584_s2 = inlined_call_operand.vmem [shape: f32[1,128], index: 2, kind: input, shape index: {}]   ;;  %s585_s3 = inlined_call_operand.hbm [shape: f32[128,128], index: 3, kind: input, shape index: {}]   ;;  %s586_s4 = inlined_call_operand.vmem [shape: f32[1,128], index: 4, kind: input, shape index: {}]   ;;  %s587_s5 = inlined_call_operand.hbm [shape: f32[128,128], index: 5, kind: input, shape index: {}]   ;;  %s588_s6 = inlined_call_operand.vmem [shape: f32[1,128], index: 6, kind: input, shape index: {}]   ;;  %s589_s7 = inlined_call_operand.hbm [shape: f32[64,128], index: 7, kind: output, shape index: {}]  }
   0x1   :  { %13 = vsyncpa [#allocation6], 0 }
   0x2   :  { %14 = vsyncpa [#allocation9], 0 }
   0x3   :  { %15 = vsyncpa [#allocation4], 0  ;;  %s33_s26 = sshll.u32 %s583_s1, 4  ;;  %s496_s27 = smov [#allocation5]   ;;  %s34_s26 = int_to_ptr.hbm [resolvable:$true] %s33_s26 }
   0x4   :  { %s35_s28 = sshll.u32 %s496_s27, 4  ;;  %s20_s8 = sshll.u32 %s582_s0, 4  ;;  %s36_s28 = int_to_ptr.vmem [resolvable:$true] %s35_s28  ;;  %s21_s8 = int_to_ptr.hbm [resolvable:$true] %s20_s8 }
   0x5   :  { %s497_s9 = smov 128   ;;  %s498_s10 = smov 8  }
   0x6   :  { %41 = dma.hbm_to_vmem [thread:$0]  %s34_s26, 2048, %s36_s28, [#allocation6], %s497_s9, %s497_s9, %s498_s10  }
   0x7   :  { %s499_s11 = smov [#allocation2]   ;;  %s48_s1 = sshll.u32 %s585_s3, 4  ;;  %s49_s1 = int_to_ptr.hbm [resolvable:$true] %s48_s1 }
   0x8   :  { %s22_s12 = sshll.u32 %s499_s11, 4  ;;  %s63_s16 = sshll.u32 %s587_s5, 4  ;;  %s23_s12 = int_to_ptr.vmem [resolvable:$true] %s22_s12  ;;  %s64_s16 = int_to_ptr.hbm [resolvable:$true] %s63_s16 }
   0x9   :  { %28 = dma.hbm_to_vmem [thread:$0]  %s21_s8, 1024, %s23_s12, [#allocation3], %s497_s9, %s497_s9, %s498_s10  }
   0xa   :  { %s500_s17 = smov [#allocation7]   ;;  %s501_s19 = smov [#allocation8]  }
   0xb   :  { %s50_s18 = sshll.u32 %s500_s17, 4  ;;  %s65_s3 = sshll.u32 %s501_s19, 4  ;;  %s51_s18 = int_to_ptr.vmem [resolvable:$true] %s50_s18  ;;  %s66_s3 = int_to_ptr.vmem [resolvable:$true] %s65_s3 }
   0xc   :  { %56 = dma.hbm_to_vmem [thread:$0]  %s49_s1, 2048, %s51_s18, [#allocation6], %s497_s9, %s497_s9, %s498_s10  }
   0xd   :  { %71 = dma.hbm_to_vmem [thread:$0]  %s64_s16, 2048, %s66_s3, [#allocation9], %s497_s9, %s497_s9, %s498_s10  }
   0xe   :  { %488 = dma.done.wait [#allocation3], 1024  }
   0xf   :  { %489 = vsyncadd [#allocation3], 4294966272 }
  0x10   :  { %490 = dma.done.wait [#allocation6], 4096  }
  0x11   :  { %491 = vsyncadd [#allocation6], 4294963200 }
  0x12   :  { %492 = dma.done.wait [#allocation9], 2048  }
  0x13   :  { %493 = vsyncadd [#allocation9], 4294965248  ;;  %v113_v0 = vld [vmem:[#allocation5 + $0x78] sm:$0xff]  ;;  %v112_v1 = vld [vmem:[#allocation5 + $0x70] sm:$0xff]  ;;  %s311_s26 = sshll.u32 %s589_s7, 4  ;;  %s312_s26 = int_to_ptr.hbm [resolvable:$true] %s311_s26 }
  0x14   :  { %118 = vmatpush.msra.mxu0 %v113_v0  ;;  %326 = vmatpush.msra.mxu3 %v113_v0  ;;  %v111_v2 = vld [vmem:[#allocation5 + $0x68] sm:$0xff]  ;;  %v110_v3 = vld [vmem:[#allocation5 + $0x60] sm:$0xff]  ;;  %v109_v4 = vld [vmem:[#allocation5 + $0x58] sm:$0xff] }
  0x15   :  { %v108_v5 = vld [vmem:[#allocation5 + $0x50] sm:$0xff]  ;;  %v107_v6 = vld [vmem:[#allocation5 + $0x48] sm:$0xff]  ;;  %v106_v7 = vld [vmem:[#allocation5 + $0x40] sm:$0xff] }
  0x16   :  { %119 = vmatpush.msra.mxu0 %v112_v1  ;;  %327 = vmatpush.msra.mxu3 %v112_v1  ;;  %v105_v8 = vld [vmem:[#allocation5 + $0x38] sm:$0xff]  ;;  %v104_v9 = vld [vmem:[#allocation5 + $0x30] sm:$0xff]  ;;  %v103_v10 = vld [vmem:[#allocation5 + $0x28] sm:$0xff] }
  0x17   :  { %v102_v11 = vld [vmem:[#allocation5 + $0x20] sm:$0xff]  ;;  %v101_v12 = vld [vmem:[#allocation5 + $0x18] sm:$0xff]  ;;  %v100_v13 = vld [vmem:[#allocation5 + $0x10] sm:$0xff] }
  0x18   :  { %120 = vmatpush.msra.mxu0 %v111_v2  ;;  %328 = vmatpush.msra.mxu3 %v111_v2  ;;  %v99_v14 = vld [vmem:[#allocation5 + $0x8] sm:$0xff]  ;;  %v98_v15 = vld [vmem:[#allocation5] sm:$0xff]  ;;  %v96_v17 = vld [vmem:[#allocation2 + $0x30] sm:$0xff] }
  0x19   :  { %v90_v16 = vld [vmem:[#allocation2] sm:$0xff]  ;;  %v91_v18 = vld [vmem:[#allocation2 + $0x8] sm:$0xff]  ;;  %v97_v19 = vld [vmem:[#allocation2 + $0x38] sm:$0xff] }
  0x1a   :  { %121 = vmatpush.msra.mxu0 %v110_v3  ;;  %329 = vmatpush.msra.mxu3 %v110_v3  ;;  %v182_v20 = vld [vmem:[#allocation7 + $0x78] sm:$0xff]  ;;  %v181_v21 = vld [vmem:[#allocation7 + $0x70] sm:$0xff]  ;;  %v180_v22 = vld [vmem:[#allocation7 + $0x68] sm:$0xff] }
  0x1b   :  { %187 = vmatpush.msra.mxu1 %v182_v20  ;;  %v179_v23 = vld [vmem:[#allocation7 + $0x60] sm:$0xff]  ;;  %v92_v24 = vld [vmem:[#allocation2 + $0x10] sm:$0xff]  ;;  %v178_v25 = vld [vmem:[#allocation7 + $0x58] sm:$0xff] }
  0x1c   :  { %122 = vmatpush.msra.mxu0 %v109_v4  ;;  %330 = vmatpush.msra.mxu3 %v109_v4  ;;  %v177_v26 = vld [vmem:[#allocation7 + $0x50] sm:$0xff]  ;;  %v176_v27 = vld [vmem:[#allocation7 + $0x48] sm:$0xff]  ;;  %v175_v28 = vld [vmem:[#allocation7 + $0x40] sm:$0xff] }
  0x1d   :  { %188 = vmatpush.msra.mxu1 %v181_v21  ;;  %v93_v29 = vld [vmem:[#allocation2 + $0x18] sm:$0xff]  ;;  %v173_v31 = vld [vmem:[#allocation7 + $0x30] sm:$0xff]  ;;  %v172_v32 = vld [vmem:[#allocation7 + $0x28] sm:$0xff] }
  0x1e   :  { %123 = vmatpush.msra.mxu0 %v108_v5  ;;  %331 = vmatpush.msra.mxu3 %v108_v5  ;;  %v174_v30 = vld [vmem:[#allocation7 + $0x38] sm:$0xff]  ;;  %v171_v33 = vld [vmem:[#allocation7 + $0x20] sm:$0xff]  ;;  %v95_v36 = vld [vmem:[#allocation2 + $0x28] sm:$0xff] }
  0x1f   :  { %189 = vmatpush.msra.mxu1 %v180_v22  ;;  %v94_v34 = vld [vmem:[#allocation2 + $0x20] sm:$0xff]  ;;  %v170_v35 = vld [vmem:[#allocation7 + $0x18] sm:$0xff]  ;;  %v169_v37 = vld [vmem:[#allocation7 + $0x10] sm:$0xff] }
  0x20   :  { %124 = vmatpush.msra.mxu0 %v107_v6  ;;  %332 = vmatpush.msra.mxu3 %v107_v6  ;;  %v168_v38 = vld [vmem:[#allocation7 + $0x8] sm:$0xff]  ;;  %v167_v39 = vld [vmem:[#allocation7] sm:$0xff]  ;;  %v251_v54 = vld [vmem:[#allocation8 + $0x78] sm:$0xff] }
  0x21   :  { %190 = vmatpush.msra.mxu1 %v179_v23  ;;  %v365_v40 = vld [vmem:[%s584_s2] ss:$0 sm:$0xff]  ;;  %v250_v55 = vld [vmem:[#allocation8 + $0x70] sm:$0xff]  ;;  %256 = vmatpush.msra.mxu2 %v251_v54  ;;  %v249_v56 = vld [vmem:[#allocation8 + $0x68] sm:$0xff] }
  0x22   :  { %125 = vmatpush.msra.mxu0 %v106_v7  ;;  %333 = vmatpush.msra.mxu3 %v106_v7  ;;  %v248_v59 = vld [vmem:[#allocation8 + $0x60] sm:$0xff]  ;;  %v247_v61 = vld [vmem:[#allocation8 + $0x58] sm:$0xff]  ;;  %v246_v62 = vld [vmem:[#allocation8 + $0x50] sm:$0xff] }
  0x23   :  { %191 = vmatpush.msra.mxu1 %v178_v25  ;;  %257 = vmatpush.msra.mxu2 %v250_v55  ;;  %v245_v63 = vld [vmem:[#allocation8 + $0x48] sm:$0xff]  ;;  %v244_v2 = vld [vmem:[#allocation8 + $0x40] sm:$0xff]  ;;  %v243_v4 = vld [vmem:[#allocation8 + $0x38] sm:$0xff] }
  0x24   :  { %126 = vmatpush.msra.mxu0 %v105_v8  ;;  %334 = vmatpush.msra.mxu3 %v105_v8  ;;  %v242_v5 = vld [vmem:[#allocation8 + $0x30] sm:$0xff]  ;;  %v241_v6 = vld [vmem:[#allocation8 + $0x28] sm:$0xff] }
  0x25   :  { %192 = vmatpush.msra.mxu1 %v177_v26  ;;  %258 = vmatpush.msra.mxu2 %v249_v56 }
  0x26   :  { %127 = vmatpush.msra.mxu0 %v104_v9  ;;  %335 = vmatpush.msra.mxu3 %v104_v9  ;;  %v240_v9 = vld [vmem:[#allocation8 + $0x20] sm:$0xff] }
  0x27   :  { %193 = vmatpush.msra.mxu1 %v176_v27  ;;  %259 = vmatpush.msra.mxu2 %v248_v59 }
  0x28   :  { %128 = vmatpush.msra.mxu0 %v103_v10  ;;  %336 = vmatpush.msra.mxu3 %v103_v10 }
  0x29   :  { %194 = vmatpush.msra.mxu1 %v175_v28  ;;  %260 = vmatpush.msra.mxu2 %v247_v61 }
  0x2a   :  { %129 = vmatpush.msra.mxu0 %v102_v11  ;;  %337 = vmatpush.msra.mxu3 %v102_v11  ;;  %v239_v11 = vld [vmem:[#allocation8 + $0x18] sm:$0xff] }
  0x2b   :  { %195 = vmatpush.msra.mxu1 %v174_v30  ;;  %261 = vmatpush.msra.mxu2 %v246_v62 }
  0x2c   :  { %130 = vmatpush.msra.mxu0 %v101_v12  ;;  %338 = vmatpush.msra.mxu3 %v101_v12 }
  0x2d   :  { %196 = vmatpush.msra.mxu1 %v173_v31  ;;  %262 = vmatpush.msra.mxu2 %v245_v63 }
  0x2e   :  { %131 = vmatpush.msra.mxu0 %v100_v13  ;;  %339 = vmatpush.msra.mxu3 %v100_v13 }
  0x2f   :  { %197 = vmatpush.msra.mxu1 %v172_v32  ;;  %263 = vmatpush.msra.mxu2 %v244_v2 }
  0x30   :  { %132 = vmatpush.msra.mxu0 %v99_v14  ;;  %340 = vmatpush.msra.mxu3 %v99_v14  ;;  %v238_v14 = vld [vmem:[#allocation8 + $0x10] sm:$0xff] }
  0x31   :  { %198 = vmatpush.msra.mxu1 %v171_v33  ;;  %264 = vmatpush.msra.mxu2 %v243_v4 }
  0x32   :  { %133 = vmatpush.msra.mxu0 %v98_v15  ;;  %341 = vmatpush.msra.mxu3 %v98_v15  ;;  %v237_v15 = vld [vmem:[#allocation8 + $0x8] sm:$0xff] }
  0x33   :  { %134 = vmatmul.f32.vlgmr.msra.gmra.mxu0 %v90_v16  ;;  %152 = vmatmul.f32.vlgmr.msra.gmra.mxu3 %v96_v17  ;;  %v236_v16 = vld [vmem:[#allocation8] sm:$0xff] }
  0x34   :  { %342 = vmatpush.msrb.mxu3 %v182_v20  ;;  %199 = vmatpush.msra.mxu1 %v170_v35  ;;  %v366_v17 = vld [vmem:[%s586_s4] ss:$0 sm:$0xff] }
  0x35   :  { %265 = vmatpush.msra.mxu2 %v242_v5 }
  0x36   :  { %343 = vmatpush.msrb.mxu3 %v181_v21  ;;  %200 = vmatpush.msra.mxu1 %v169_v37 }
  0x37   :  { %266 = vmatpush.msra.mxu2 %v241_v6 }
  0x38   :  { %344 = vmatpush.msrb.mxu3 %v180_v22  ;;  %201 = vmatpush.msra.mxu1 %v168_v38 }
  0x39   :  { %267 = vmatpush.msra.mxu2 %v240_v9 }
  0x3a   :  { %345 = vmatpush.msrb.mxu3 %v179_v23  ;;  %202 = vmatpush.msra.mxu1 %v167_v39 }
  0x3b   :  { %137 = vmatmul.f32.gmra.mxu0 %v91_v18  ;;  %155 = vmatmul.f32.gmra.mxu3 %v97_v19 }
  0x3c   :  { %346 = vmatpush.msrb.mxu3 %v178_v25  ;;  %268 = vmatpush.msra.mxu2 %v239_v11 }
  0x3e   :  { %347 = vmatpush.msrb.mxu3 %v177_v26  ;;  %269 = vmatpush.msra.mxu2 %v238_v14 }
  0x40   :  { %348 = vmatpush.msrb.mxu3 %v176_v27  ;;  %270 = vmatpush.msra.mxu2 %v237_v15 }
  0x42   :  { %349 = vmatpush.msrb.mxu3 %v175_v28  ;;  %271 = vmatpush.msra.mxu2 %v236_v16 }
  0x43   :  { %140 = vmatmul.f32.gmra.mxu0 %v92_v24 }
  0x44   :  { %350 = vmatpush.msrb.mxu3 %v174_v30 }
  0x46   :  { %351 = vmatpush.msrb.mxu3 %v173_v31 }
  0x48   :  { %352 = vmatpush.msrb.mxu3 %v172_v32 }
  0x4a   :  { %353 = vmatpush.msrb.mxu3 %v171_v33 }
  0x4b   :  { %143 = vmatmul.f32.gmra.mxu0 %v93_v29 }
  0x4c   :  { %354 = vmatpush.msrb.mxu3 %v170_v35 }
  0x4e   :  { %355 = vmatpush.msrb.mxu3 %v169_v37 }
  0x50   :  { %356 = vmatpush.msrb.mxu3 %v168_v38 }
  0x52   :  { %357 = vmatpush.msrb.mxu3 %v167_v39 }
  0x53   :  { %146 = vmatmul.f32.gmra.mxu0 %v94_v34 }
  0x5b   :  { %149 = vmatmul.f32.gmra.mxu0 %v95_v36 }
  0xb0   :  { %v135_v41 = vpop.f32.mrf.mxu0 }
  0xb1   :  { %v136_v42 = vadd.f32 %v365_v40, %v135_v41 }
  0xb3   :  { %v159_v43 = vmax.f32 %v136_v42, 0.0  ;;  %v367_v42 = vld [vmem:[%s588_s6] ss:$0 sm:$0xff]  ;;  %s502_s6 = smov [#allocation10]  }
  0xb4   :  { %s309_s23 = sshll.u32 %s502_s6, 4  ;;  %s310_s23 = int_to_ptr.vmem [resolvable:$true] %s309_s23 }
  0xb5   :  { %203 = vmatmul.f32.vlgmr.msra.gmra.mxu1 %v159_v43 }
  0xb6   :  { %v153_v46 = vpop.f32.mrf.mxu3 }
  0xb7   :  { %v154_v12 = vadd.f32 %v365_v40, %v153_v46 }
  0xb8   :  { %v138_v44 = vpop.f32.mrf.mxu0 }
  0xb9   :  { %v139_v45 = vadd.f32 %v365_v40, %v138_v44  ;;  %v165_v13 = vmax.f32 %v154_v12, 0.0 }
  0xbb   :  { %v160_v47 = vmax.f32 %v139_v45, 0.0 }
  0xbd   :  { %206 = vmatmul.f32.gmra.mxu1 %v160_v47 }
  0xbe   :  { %v156_v50 = vpop.f32.mrf.mxu3 }
  0xbf   :  { %v157_v52 = vadd.f32 %v365_v40, %v156_v50 }
  0xc0   :  { %v141_v48 = vpop.f32.mrf.mxu0 }
  0xc1   :  { %v142_v49 = vadd.f32 %v365_v40, %v141_v48  ;;  %v166_v53 = vmax.f32 %v157_v52, 0.0 }
  0xc3   :  { %v161_v51 = vmax.f32 %v142_v49, 0.0  ;;  %224 = vmatmul.f32.vlgmr.msrb.gmra.mxu3 %v166_v53 }
  0xc5   :  { %209 = vmatmul.f32.gmra.mxu1 %v161_v51 }
  0xc8   :  { %v144_v57 = vpop.f32.mrf.mxu0 }
  0xc9   :  { %v145_v58 = vadd.f32 %v365_v40, %v144_v57 }
  0xcb   :  { %v162_v60 = vmax.f32 %v145_v58, 0.0 }
  0xcd   :  { %212 = vmatmul.f32.gmra.mxu1 %v162_v60 }
  0xd0   :  { %v147_v0 = vpop.f32.mrf.mxu0 }
  0xd1   :  { %v148_v1 = vadd.f32 %v365_v40, %v147_v0 }
  0xd3   :  { %v163_v3 = vmax.f32 %v148_v1, 0.0 }
  0xd5   :  { %215 = vmatmul.f32.gmra.mxu1 %v163_v3 }
  0xd8   :  { %v150_v7 = vpop.f32.mrf.mxu0 }
  0xd9   :  { %v151_v8 = vadd.f32 %v365_v40, %v150_v7 }
  0xdb   :  { %v164_v10 = vmax.f32 %v151_v8, 0.0 }
  0xdd   :  { %218 = vmatmul.f32.gmra.mxu1 %v164_v10 }
  0xe5   :  { %221 = vmatmul.f32.gmra.mxu1 %v165_v13 }
 0x132   :  { %v204_v18 = vpop.f32.mrf.mxu1 }
 0x133   :  { %v205_v19 = vadd.f32 %v366_v17, %v204_v18 }
 0x135   :  { %v228_v20 = vmax.f32 %v205_v19, 0.0 }
 0x137   :  { %272 = vmatmul.f32.vlgmr.msra.gmra.mxu2 %v228_v20 }
 0x13a   :  { %v207_v21 = vpop.f32.mrf.mxu1 }
 0x13b   :  { %v208_v22 = vadd.f32 %v366_v17, %v207_v21 }
 0x13d   :  { %v229_v23 = vmax.f32 %v208_v22, 0.0 }
 0x13f   :  { %275 = vmatmul.f32.gmra.mxu2 %v229_v23 }
 0x142   :  { %v210_v24 = vpop.f32.mrf.mxu1 }
 0x143   :  { %v211_v25 = vadd.f32 %v366_v17, %v210_v24 }
 0x145   :  { %v230_v26 = vmax.f32 %v211_v25, 0.0 }
 0x146   :  { %v225_v38 = vpop.f32.mrf.mxu3 }
 0x147   :  { %278 = vmatmul.f32.gmra.mxu2 %v230_v26  ;;  %v226_v40 = vadd.f32 %v366_v17, %v225_v38 }
 0x149   :  { %v235_v41 = vmax.f32 %v226_v40, 0.0 }
 0x14a   :  { %v213_v27 = vpop.f32.mrf.mxu1 }
 0x14b   :  { %v214_v28 = vadd.f32 %v366_v17, %v213_v27 }
 0x14d   :  { %v231_v29 = vmax.f32 %v214_v28, 0.0 }
 0x14f   :  { %281 = vmatmul.f32.gmra.mxu2 %v231_v29 }
 0x152   :  { %v216_v30 = vpop.f32.mrf.mxu1 }
 0x153   :  { %v217_v31 = vadd.f32 %v366_v17, %v216_v30 }
 0x155   :  { %v232_v32 = vmax.f32 %v217_v31, 0.0 }
 0x157   :  { %284 = vmatmul.f32.gmra.mxu2 %v232_v32 }
 0x15a   :  { %v219_v33 = vpop.f32.mrf.mxu1 }
 0x15b   :  { %v220_v34 = vadd.f32 %v366_v17, %v219_v33 }
 0x15d   :  { %v233_v35 = vmax.f32 %v220_v34, 0.0 }
 0x15f   :  { %287 = vmatmul.f32.gmra.mxu2 %v233_v35 }
 0x162   :  { %v222_v36 = vpop.f32.mrf.mxu1 }
 0x163   :  { %v223_v37 = vadd.f32 %v366_v17, %v222_v36 }
 0x165   :  { %v234_v39 = vmax.f32 %v223_v37, 0.0 }
 0x167   :  { %290 = vmatmul.f32.gmra.mxu2 %v234_v39 }
 0x16f   :  { %293 = vmatmul.f32.gmra.mxu2 %v235_v41 }
 0x1ba   :  { %v273_v43 = vpop.f32.mrf.mxu2 }
 0x1bb   :  { %v274_v44 = vadd.f32 %v367_v42, %v273_v43 }
 0x1bd   :  { %297 = vst [vmem:[#allocation10] sm:$0xff] %v274_v44 }
 0x1c2   :  { %v276_v45 = vpop.f32.mrf.mxu2 }
 0x1c3   :  { %v277_v46 = vadd.f32 %v367_v42, %v276_v45 }
 0x1c5   :  { %298 = vst [vmem:[#allocation10 + $0x8] sm:$0xff] %v277_v46 }
 0x1ca   :  { %v279_v47 = vpop.f32.mrf.mxu2 }
 0x1cb   :  { %v280_v48 = vadd.f32 %v367_v42, %v279_v47 }
 0x1cd   :  { %299 = vst [vmem:[#allocation10 + $0x10] sm:$0xff] %v280_v48 }
 0x1d2   :  { %v282_v49 = vpop.f32.mrf.mxu2 }
 0x1d3   :  { %v283_v50 = vadd.f32 %v367_v42, %v282_v49 }
 0x1d5   :  { %300 = vst [vmem:[#allocation10 + $0x18] sm:$0xff] %v283_v50 }
 0x1da   :  { %v285_v51 = vpop.f32.mrf.mxu2 }
 0x1db   :  { %v286_v52 = vadd.f32 %v367_v42, %v285_v51 }
 0x1dd   :  { %301 = vst [vmem:[#allocation10 + $0x20] sm:$0xff] %v286_v52 }
 0x1e2   :  { %v288_v53 = vpop.f32.mrf.mxu2 }
 0x1e3   :  { %v289_v54 = vadd.f32 %v367_v42, %v288_v53 }
 0x1e5   :  { %302 = vst [vmem:[#allocation10 + $0x28] sm:$0xff] %v289_v54 }
 0x1ea   :  { %v291_v55 = vpop.f32.mrf.mxu2 }
 0x1eb   :  { %v292_v56 = vadd.f32 %v367_v42, %v291_v55 }
 0x1ed   :  { %303 = vst [vmem:[#allocation10 + $0x30] sm:$0xff] %v292_v56 }
 0x1f2   :  { %v294_v57 = vpop.f32.mrf.mxu2 }
 0x1f3   :  { %v295_v58 = vadd.f32 %v367_v42, %v294_v57 }
 0x1f5   :  { %304 = vst [vmem:[#allocation10 + $0x38] sm:$0xff] %v295_v58 }
 0x1f6   :  { %317 = dma.vmem_to_hbm [thread:$0]  %s310_s23, 1024, %s312_s26, [#allocation4], %s497_s9, %s497_s9, %s498_s10  }
 0x1f7   :  { %494 = dma.done.wait [#allocation4], 1024  }
 0x1f8   :  { %495 = vsyncadd [#allocation4], 4294966272 }
 0x1f9   :  { %322 = vsyncpa [#allocation3], 1 }
 0x1fa   :  { %323 = vsyncpa [#allocation6], 1 }
 0x1fb   :  { %324 = vsyncpa [#allocation9], 1 }
 0x1fc   :  { %325 = vsyncpa [#allocation4], 1 }

</bundles_post_ra>
